<compile_context>
chip_gen: v5e
topology: v5e:2x2
jax: 0.10.0
libtpu: 0.0.40
codegen_flags: <defaults>
</compile_context>

<pallas_src>
import functools

import jax
import jax.numpy as jnp
from jax.experimental import pallas as pl
from jax.experimental.pallas import tpu as pltpu


def _round_up(x, m):
    return ((x + m - 1) // m) * m


def _ge2e_contrastive_kernel(w_ref, b_ref, e_ref, loss_ref, *, num_speakers, num_utterances):
    S = num_speakers
    U = num_utterances
    SU, D = e_ref.shape
    S_pad = _round_up(S, 8)            # sel rows / G lane width (any S <= 128 is one lane block)

    w = w_ref[0]
    b = b_ref[0]

    e_in = e_ref[...]
    e_f32 = e_in.astype(jnp.float32)    # norms / epilogue stay f32 (v5e-friendly)
    e_bf16 = e_in.astype(jnp.bfloat16)  # MXU operands in bf16, f32 accumulation

    # ---- speaker sums via 0/1 selection-matrix matmul (tiny: only S_pad rows pushed) ----
    # sel[p, i] = 1 iff utterance-row i belongs to speaker p.
    p_iota = jax.lax.broadcasted_iota(jnp.int32, (S_pad, SU), 0)
    i_iota = jax.lax.broadcasted_iota(jnp.int32, (S_pad, SU), 1)
    lo = p_iota * U
    sel = jnp.logical_and(i_iota >= lo, i_iota < lo + U).astype(jnp.bfloat16)
    spk_sum = jnp.dot(sel, e_bf16, preferred_element_type=jnp.float32)      # (S_pad, D) f32

    # ---- masks over the (SU, S_pad) similarity tile (same p*U bounds, no int divide) ----
    row_idx = jax.lax.broadcasted_iota(jnp.int32, (SU, S_pad), 0)
    spk_col = jax.lax.broadcasted_iota(jnp.int32, (SU, S_pad), 1)
    lo_t = spk_col * U
    is_diag = jnp.logical_and(row_idx >= lo_t, row_idx < lo_t + U)   # own-speaker column
    is_pad = spk_col >= S                                            # padded speaker columns

    # ---- single MXU matmul: G[i, s] = e_i . spk_sum[s] (contract last dims) -------------
    G = jax.lax.dot_general(
        e_bf16, spk_sum.astype(jnp.bfloat16),
        dimension_numbers=(((1,), (1,)), ((), ())),
        preferred_element_type=jnp.float32)                          # (SU, S_pad) f32

    ne2 = jnp.sum(e_f32 * e_f32, axis=-1, keepdims=True)             # (SU, 1)   ||e_i||^2
    Gd = jnp.where(is_diag, G, 0.0)
    g_own = jnp.sum(Gd, axis=1, keepdims=True)                       # (SU, 1)   e_i . spk_sum[spk(i)]
    nspk2 = jnp.sum(Gd, axis=0, keepdims=True)                       # (1, S_pad) ||spk_sum[s]||^2
    nspk2_own = jnp.sum(jnp.where(is_diag, nspk2, 0.0), axis=1, keepdims=True)   # (SU, 1)

    eps = 1e-8                                                       # F.cosine_similarity eps
    inv_u1 = 1.0 / (U - 1)

    # Leave-one-out cosine (same speaker), fused algebraically -- no (S,U,D) temporary:
    #   uc        = (spk_sum - e) / (U-1)
    #   e.uc      = (g_own - ||e||^2) / (U-1)
    #   ||uc||^2  = (||spk_sum||^2 - 2 g_own + ||e||^2) / (U-1)^2
    dot_same = (g_own - ne2) * inv_u1
    nuc2 = (nspk2_own - 2.0 * g_own + ne2) * (inv_u1 * inv_u1)
    cos_same = dot_same * jax.lax.rsqrt(jnp.maximum(ne2 * nuc2, eps * eps))

    # Centroid cosine: (G/U) / max(||e||*||spk_sum||/U, eps)
    #                = G * rsqrt(max(||e||^2 * ||spk_sum||^2, (U*eps)^2))
    cos_diff = G * jax.lax.rsqrt(jnp.maximum(ne2 * nspk2, (float(U) * eps) ** 2))

    cossim = jnp.where(is_diag, cos_same, cos_diff) + 1e-6
    sig = jax.nn.sigmoid(w * cossim + b)

    pos = jnp.sum(jnp.where(is_diag, sig, 0.0), axis=-1, keepdims=True)          # (SU, 1)
    # -inf sentinel safe: S >= 2 guarantees a non-diag, non-pad column in every row.
    neg = jnp.max(jnp.where(jnp.logical_or(is_diag, is_pad), -jnp.inf, sig),
                  axis=-1, keepdims=True)                                        # (SU, 1)
    per_embedding_loss = 1.0 - pos + neg
    loss_ref[...] = jnp.sum(per_embedding_loss, keepdims=True)                   # (1, 1)


def ge2e_contrastive_loss(embeddings, w=10.0, b=-5.0):
    """embeddings: (S, U, D) float array (f32 or bf16). Returns scalar f32 loss."""
    S, U, D = embeddings.shape
    if S < 2 or U < 2:
        raise ValueError("GE2E needs >= 2 speakers and >= 2 utterances per speaker")
    SU = S * U
    S_pad = _round_up(S, 8)

    # v7x guard (32 MiB scoped / 64 MiB physical VMEM): rough live-set = e (input + f32 +
    # bf16 copies) + spk_sum + ~8 lane-padded (SU, 128) f32 similarity-tile temporaries.
    itemsize = jnp.dtype(embeddings.dtype).itemsize
    vmem_bytes = (SU * D * (itemsize + 4 + 2)
                  + S_pad * D * 6
                  + 8 * SU * max(S_pad, 128) * 4)
    if vmem_bytes > 20 * 1024 * 1024:
        # TODO(synk): add the row-tiled 1-D grid over SU (spk_sum in a first pass,
        # (1,1) loss accumulator) instead of raising, for very large batches.
        raise ValueError(
            f"batch too large for the gridless kernel (~{vmem_bytes / 2**20:.1f} MiB VMEM)")

    # Flatten in the wrapper: XLA layout plumbing, avoids an in-kernel sublane repack
    # when U is not a multiple of 8 (typical GE2E U=10).
    e_flat = embeddings.reshape(SU, D)
    w_arr = jnp.asarray([w], dtype=jnp.float32)
    b_arr = jnp.asarray([b], dtype=jnp.float32)

    cost = pl.CostEstimate(
        flops=4 * SU * D * S_pad + 16 * SU * S_pad,      # sel matmul + G matmul + epilogue
        transcendentals=SU * S_pad + 2 * SU,             # sigmoid + rsqrt
        bytes_accessed=SU * D * itemsize + 2 * 4 + 4,
    )

    kernel = functools.partial(_ge2e_contrastive_kernel,
                               num_speakers=S, num_utterances=U)
    out = pl.pallas_call(
        kernel,
        out_shape=jax.ShapeDtypeStruct((1, 1), jnp.float32),
        in_specs=[
            pl.BlockSpec(memory_space=pltpu.MemorySpace.SMEM),   # w scalar
            pl.BlockSpec(memory_space=pltpu.MemorySpace.SMEM),   # b scalar
            pl.BlockSpec(memory_space=pltpu.MemorySpace.VMEM),   # e_flat (SU, D)
        ],
        out_specs=pl.BlockSpec(memory_space=pltpu.MemorySpace.VMEM),
        cost_estimate=cost,
    )(w_arr, b_arr, e_flat)
    return out[0, 0]


def _reference_loss(e, w=10.0, b=-5.0):
    """Pure-JAX f32 reference matching the PyTorch semantics."""
    S, U, D = e.shape
    e = e.astype(jnp.float32)
    spk_sum = e.sum(1)
    centroids = spk_sum / U
    uc = (spk_sum[:, None, :] - e) / (U - 1)

    def cos(a, c):
        num = jnp.sum(a * c, -1)
        den = jnp.maximum(
            jnp.linalg.norm(a, axis=-1) * jnp.linalg.norm(c, axis=-1), 1e-8)
        return num / den

    cos_same = cos(e, uc)                                             # (S, U)
    cos_diff = cos(e[:, :, None, :], centroids[None, None, :, :])     # (S, U, S)
    eye = jnp.eye(S, dtype=bool)[:, None, :]                          # (S, 1, S)
    cossim = jnp.where(eye, cos_same[:, :, None], cos_diff) + 1e-6
    sim = w * cossim + b
    sig = jax.nn.sigmoid(sim)
    pos = jnp.sum(jnp.where(eye, sig, 0.0), -1)
    neg = jnp.max(jnp.where(eye, -jnp.inf, sig), -1)
    return jnp.sum(1.0 - pos + neg)


if __name__ == "__main__":
    # speakers, utterances/speaker (deliberately not a multiple of 8), embedding dim
    S, U, D = 4, 10, 64
    key = jax.random.PRNGKey(0)
    emb = jax.random.normal(key, (S, U, D), dtype=jnp.float32)

    loss = jax.block_until_ready(ge2e_contrastive_loss(emb))
    ref = jax.block_until_ready(_reference_loss(emb))
    # bf16 MXU operands (f32 accumulation / f32 epilogue) -> slightly looser tolerance.
    assert jnp.allclose(loss, ref, rtol=5e-3, atol=5e-2), (loss, ref)

    # bf16-embeddings end-to-end path (halves the HBM->VMEM DMA); compare against the
    # f32 reference evaluated on the same bf16-quantized values.
    emb_bf16 = emb.astype(jnp.bfloat16)
    loss_bf16 = jax.block_until_ready(ge2e_contrastive_loss(emb_bf16))
    ref_bf16 = jax.block_until_ready(_reference_loss(emb_bf16.astype(jnp.float32)))
    assert jnp.allclose(loss_bf16, ref_bf16, rtol=1e-2, atol=1e-1), (loss_bf16, ref_bf16)

    print("KERNEL_OK")
</pallas_src>

<mosaic_0001>
module attributes {stable_mosaic.version = 11 : i64} {
  func.func @_ge2e_contrastive_kernel(%arg0: memref<1xf32, #tpu.memory_space<smem>>, %arg1: memref<1xf32, #tpu.memory_space<smem>>, %arg2: memref<40x64xf32, #tpu.memory_space<vmem>>, %arg3: memref<1x1xf32, #tpu.memory_space<vmem>>) attributes {dimension_semantics = [], scalar_prefetch = 0 : i64, scratch_operands = 0 : i64, tpu.core_type = #tpu.core_type<tc>} {
    %c0 = arith.constant 0 : index
    %0 = memref.load %arg0[%c0] : memref<1xf32, #tpu.memory_space<smem>>
    %c0_0 = arith.constant 0 : index
    %1 = memref.load %arg1[%c0_0] : memref<1xf32, #tpu.memory_space<smem>>
    %c0_1 = arith.constant 0 : index
    %c0_2 = arith.constant 0 : index
    %2 = vector.load %arg2[%c0_1, %c0_2] : memref<40x64xf32, #tpu.memory_space<vmem>>, vector<40x64xf32>
    %3 = arith.truncf %2 : vector<40x64xf32> to vector<40x64xbf16>
    %4 = tpu.iota {dimensions = array<i32: 0>} : vector<8x40xi32>
    %5 = tpu.iota {dimensions = array<i32: 1>} : vector<8x40xi32>
    %c10_i32 = arith.constant 10 : i32
    %6 = vector.broadcast %c10_i32 : i32 to vector<8x40xi32>
    %7 = arith.muli %4, %6 : vector<8x40xi32>
    %8 = arith.cmpi sge, %5, %7 : vector<8x40xi32>
    %c10_i32_3 = arith.constant 10 : i32
    %9 = vector.broadcast %c10_i32_3 : i32 to vector<8x40xi32>
    %10 = arith.addi %7, %9 : vector<8x40xi32>
    %11 = arith.cmpi slt, %5, %10 : vector<8x40xi32>
    %12 = arith.andi %8, %11 : vector<8x40xi1>
    %13 = arith.extui %12 : vector<8x40xi1> to vector<8x40xi32>
    %14 = arith.sitofp %13 : vector<8x40xi32> to vector<8x40xf32>
    %15 = arith.truncf %14 : vector<8x40xf32> to vector<8x40xbf16>
    %cst = arith.constant dense<0.000000e+00> : vector<8x64xf32>
    %16 = tpu.matmul %15, %3, %cst {dimension_numbers = #tpu.dot_dimension_numbers<[1], [0], [0], [1], [0, 0, 1, 1], [], []>} : vector<8x40xbf16>, vector<40x64xbf16>, vector<8x64xf32> -> vector<8x64xf32>
    %17 = tpu.iota {dimensions = array<i32: 0>} : vector<40x8xi32>
    %18 = tpu.iota {dimensions = array<i32: 1>} : vector<40x8xi32>
    %c10_i32_4 = arith.constant 10 : i32
    %19 = vector.broadcast %c10_i32_4 : i32 to vector<40x8xi32>
    %20 = arith.muli %18, %19 : vector<40x8xi32>
    %21 = arith.cmpi sge, %17, %20 : vector<40x8xi32>
    %c10_i32_5 = arith.constant 10 : i32
    %22 = vector.broadcast %c10_i32_5 : i32 to vector<40x8xi32>
    %23 = arith.addi %20, %22 : vector<40x8xi32>
    %24 = arith.cmpi slt, %17, %23 : vector<40x8xi32>
    %25 = arith.andi %21, %24 : vector<40x8xi1>
    %c4_i32 = arith.constant 4 : i32
    %26 = vector.broadcast %c4_i32 : i32 to vector<40x8xi32>
    %27 = arith.cmpi sge, %18, %26 : vector<40x8xi32>
    %28 = arith.truncf %16 : vector<8x64xf32> to vector<8x64xbf16>
    %cst_6 = arith.constant dense<0.000000e+00> : vector<40x8xf32>
    %29 = tpu.matmul %3, %28, %cst_6 {dimension_numbers = #tpu.dot_dimension_numbers<[1], [1], [0], [0], [0, 0, 1, 0], [], []>} : vector<40x64xbf16>, vector<8x64xbf16>, vector<40x8xf32> -> vector<40x8xf32>
    %30 = arith.mulf %2, %2 : vector<40x64xf32>
    %cst_7 = arith.constant dense<0.000000e+00> : vector<40xf32>
    %31 = vector.multi_reduction <add>, %30, %cst_7 [1] : vector<40x64xf32> to vector<40xf32>
    %32 = vector.shape_cast %31 : vector<40xf32> to vector<40x1xf32>
    %cst_8 = arith.constant 0.000000e+00 : f32
    %33 = vector.broadcast %cst_8 : f32 to vector<40x8xf32>
    %34 = arith.select %25, %29, %33 : vector<40x8xi1>, vector<40x8xf32>
    %cst_9 = arith.constant dense<0.000000e+00> : vector<40xf32>
    %35 = vector.multi_reduction <add>, %34, %cst_9 [1] : vector<40x8xf32> to vector<40xf32>
    %36 = vector.shape_cast %35 : vector<40xf32> to vector<40x1xf32>
    %cst_10 = arith.constant dense<0.000000e+00> : vector<8xf32>
    %37 = vector.multi_reduction <add>, %34, %cst_10 [0] : vector<40x8xf32> to vector<8xf32>
    %38 = vector.shape_cast %37 : vector<8xf32> to vector<1x8xf32>
    %cst_11 = arith.constant 0.000000e+00 : f32
    %39 = vector.shape_cast %38 : vector<1x8xf32> to vector<1x8xf32>
    %40 = vector.broadcast %39 : vector<1x8xf32> to vector<40x8xf32>
    %41 = vector.broadcast %cst_11 : f32 to vector<40x8xf32>
    %42 = arith.select %25, %40, %41 : vector<40x8xi1>, vector<40x8xf32>
    %cst_12 = arith.constant dense<0.000000e+00> : vector<40xf32>
    %43 = vector.multi_reduction <add>, %42, %cst_12 [1] : vector<40x8xf32> to vector<40xf32>
    %44 = vector.shape_cast %43 : vector<40xf32> to vector<40x1xf32>
    %45 = arith.subf %36, %32 : vector<40x1xf32>
    %cst_13 = arith.constant 0.111111112 : f32
    %46 = vector.broadcast %cst_13 : f32 to vector<40x1xf32>
    %47 = arith.mulf %45, %46 : vector<40x1xf32>
    %cst_14 = arith.constant 2.000000e+00 : f32
    %48 = vector.broadcast %cst_14 : f32 to vector<40x1xf32>
    %49 = arith.mulf %48, %36 : vector<40x1xf32>
    %50 = arith.subf %44, %49 : vector<40x1xf32>
    %51 = arith.addf %50, %32 : vector<40x1xf32>
    %cst_15 = arith.constant 0.0123456791 : f32
    %52 = vector.broadcast %cst_15 : f32 to vector<40x1xf32>
    %53 = arith.mulf %51, %52 : vector<40x1xf32>
    %54 = arith.mulf %32, %53 : vector<40x1xf32>
    %cst_16 = arith.constant 1.000000e-16 : f32
    %55 = vector.broadcast %cst_16 : f32 to vector<40x1xf32>
    %56 = arith.maximumf %54, %55 : vector<40x1xf32>
    %57 = math.rsqrt %56 : vector<40x1xf32>
    %58 = arith.mulf %47, %57 : vector<40x1xf32>
    %59 = vector.broadcast %32 : vector<40x1xf32> to vector<40x8xf32>
    %60 = vector.broadcast %38 : vector<1x8xf32> to vector<40x8xf32>
    %61 = arith.mulf %59, %60 : vector<40x8xf32>
    %cst_17 = arith.constant 9.99999982E-15 : f32
    %62 = vector.broadcast %cst_17 : f32 to vector<40x8xf32>
    %63 = arith.maximumf %61, %62 : vector<40x8xf32>
    %64 = math.rsqrt %63 : vector<40x8xf32>
    %65 = arith.mulf %29, %64 : vector<40x8xf32>
    %66 = vector.shape_cast %58 : vector<40x1xf32> to vector<40x1xf32>
    %67 = vector.broadcast %66 : vector<40x1xf32> to vector<40x8xf32>
    %68 = arith.select %25, %67, %65 : vector<40x8xi1>, vector<40x8xf32>
    %cst_18 = arith.constant 9.99999997E-7 : f32
    %69 = vector.broadcast %cst_18 : f32 to vector<40x8xf32>
    %70 = arith.addf %68, %69 : vector<40x8xf32>
    %71 = vector.broadcast %0 : f32 to vector<40x8xf32>
    %72 = arith.mulf %71, %70 : vector<40x8xf32>
    %73 = vector.broadcast %1 : f32 to vector<40x8xf32>
    %74 = arith.addf %72, %73 : vector<40x8xf32>
    %75 = arith.negf %74 : vector<40x8xf32>
    %76 = math.exp %75 : vector<40x8xf32>
    %cst_19 = arith.constant 1.000000e+00 : f32
    %77 = vector.broadcast %cst_19 : f32 to vector<40x8xf32>
    %78 = arith.addf %77, %76 : vector<40x8xf32>
    %79 = arith.divf %77, %78 : vector<40x8xf32>
    %cst_20 = arith.constant 0.000000e+00 : f32
    %80 = vector.broadcast %cst_20 : f32 to vector<40x8xf32>
    %81 = arith.select %25, %79, %80 : vector<40x8xi1>, vector<40x8xf32>
    %cst_21 = arith.constant dense<0.000000e+00> : vector<40xf32>
    %82 = vector.multi_reduction <add>, %81, %cst_21 [1] : vector<40x8xf32> to vector<40xf32>
    %83 = vector.shape_cast %82 : vector<40xf32> to vector<40x1xf32>
    %84 = arith.ori %25, %27 : vector<40x8xi1>
    %cst_22 = arith.constant 0xFF800000 : f32
    %85 = vector.broadcast %cst_22 : f32 to vector<40x8xf32>
    %86 = arith.select %84, %85, %79 : vector<40x8xi1>, vector<40x8xf32>
    %cst_23 = arith.constant dense<0xFF800000> : vector<40xf32>
    %87 = vector.multi_reduction <maximumf>, %86, %cst_23 [1] : vector<40x8xf32> to vector<40xf32>
    %88 = vector.shape_cast %87 : vector<40xf32> to vector<40x1xf32>
    %cst_24 = arith.constant 1.000000e+00 : f32
    %89 = vector.broadcast %cst_24 : f32 to vector<40x1xf32>
    %90 = arith.subf %89, %83 : vector<40x1xf32>
    %91 = arith.addf %90, %88 : vector<40x1xf32>
    %92 = vector.shape_cast %91 : vector<40x1xf32> to vector<1x40x1xf32>
    %cst_25 = arith.constant dense<0.000000e+00> : vector<1xf32>
    %93 = vector.multi_reduction <add>, %92, %cst_25 [1, 2] : vector<1x40x1xf32> to vector<1xf32>
    %94 = vector.shape_cast %93 : vector<1xf32> to vector<1x1x1xf32>
    %95 = vector.extract %94[0, 0, 0] : f32 from vector<1x1x1xf32>
    %96 = vector.broadcast %95 : f32 to vector<1x1xf32>
    %c0_26 = arith.constant 0 : index
    %c0_27 = arith.constant 0 : index
    %97 = vector.load %arg3[%c0_26, %c0_27] : memref<1x1xf32, #tpu.memory_space<vmem>>, vector<1x1xf32>
    tpu.vector_store %arg3[%c0_26, %c0_27], %96 {strides = array<i32>} : memref<1x1xf32, #tpu.memory_space<vmem>>, vector<1x1xf32>,
    return
  }
}

</mosaic_0001>

<bundles_post_ra>
// kernel: tpu_custom_call.1
= control target key start
LH: loop header
LB: loop body
LE: loop exit
PB: predicated region body
PF: predicated region fallthrough
CT: control target
= control target key end

     0   :  { %10 = vsyncpa [#allocation5], 0  ;;  %s1098_s0 = inlined_call_operand.<no memory space> [shape: f32[1], index: 0, kind: input, shape index: {}]   ;;  %s1099_s1 = inlined_call_operand.<no memory space> [shape: f32[1], index: 1, kind: input, shape index: {}]   ;;  %s1100_s2 = inlined_call_operand.hbm [shape: f32[40,64], index: 2, kind: input, shape index: {}]   ;;  %s1101_s3 = inlined_call_operand.hbm [shape: f32[1,1], index: 3, kind: output, shape index: {}]  }
   0x1   :  { %11 = vsyncpa [#allocation6], 0  ;;  %s20_s14 = sshll.u32 %s1100_s2, 4  ;;  %s688_s15 = smov [#allocation4]   ;;  %s21_s14 = int_to_ptr.hbm [resolvable:$true] %s20_s14 }
   0x2   :  { %s22_s16 = sshll.u32 %s688_s15, 4  ;;  %s689_s17 = smov 128   ;;  %s23_s16 = int_to_ptr.vmem [resolvable:$true] %s22_s16 }
   0x3   :  { %s690_s18 = smov 8  }
   0x4   :  { %28 = dma.hbm_to_vmem [thread:$0]  %s21_s14, 640, %s23_s16, [#allocation5], %s689_s17, %s689_s17, %s690_s18  }
   0x5   :  { %684 = dma.done.wait [#allocation5], 640  }
   0x6   :  { %685 = vsyncadd [#allocation5], 4294966656  ;;  %v44_v0 = vlaneseq  ;;  %v718_v5 = vld [vmem:[#allocation4 + $0x20] sm:$0xff]  ;;  %vm60_vm0 = vcmask 1043456   ;;  %v38_v7 = vld [vmem:[#allocation4 + $0x10] sm:$0xff]  ;;  %v691_v14 = vmov 0.0  }
   0x7   :  { %v43_v6 = vpack.c.bf16 %v718_v5, %v718_v5  ;;  %v722_v8 = vld [vmem:[#allocation4 + $0x18] sm:$0xff]  ;;  %v36_v11 = vld [vmem:[#allocation4] sm:$0xff]  ;;  %v37_v12 = vld [vmem:[#allocation4 + $0x8] sm:$0xff]  ;;  %vm56_vm4 = vcmask 326656   ;;  %vm100_vm5 = vcmask 523264   ;;  %v137_v21 = vmul.f32 %v38_v7, %v38_v7  ;;  %s567_s24 = sshll.u32 %s1101_s3, 4  ;;  %s568_s24 = int_to_ptr.hbm [resolvable:$true] %s567_s24 }
   0x8   :  { %v45_v1 = vshrl.u32 %v44_v0, 7  ;;  %v716_v3 = vand.u32 127, %v44_v0  ;;  %v42_v10 = vpack.c.bf16 %v722_v8, %v38_v7  ;;  %v41_v13 = vpack.c.bf16 %v37_v12, %v36_v11 }
   0x9   :  { %v62_v9 = vsel %vm60_vm0, %v43_v6, 0  ;;  %v136_v17 = vmul.f32 %v37_v12, %v37_v12  ;;  %v135_v18 = vmul.f32 %v36_v11, %v36_v11  ;;  %v146_v22 = vsel %vm100_vm5, %v137_v21, 0.0 }
   0xa   :  { %v48_v2 = vmul.u32 10, %v45_v1  ;;  %69 = vmatpush.bf16.msra.mxu0 %v62_v9  ;;  %v81_v27 = vmul.u32 10, %v716_v3  ;;  %v78_v29 = vadd.s32 16, %v45_v1  ;;  %vm160_vm9 = vcmask 64512  }
   0xb   :  { %v143_v19 = vsel %vm100_vm5, %v136_v17, 0.0  ;;  %v140_v20 = vsel %vm100_vm5, %v135_v18, 0.0  ;;  %v77_v31 = vadd.s32 8, %v45_v1  ;;  %v80_v34 = vadd.s32 32, %v45_v1 }
   0xc   :  { %v50_v4 = vadd.s32 10, %v48_v2  ;;  %vm49_vm1 = vcmp.ge.s32.totalorder %v716_v3, %v48_v2  ;;  %144 = vadd.xlane.f32.xlu0 %v143_v19  ;;  %141 = vadd.xlane.f32.xlu2 %v140_v20  ;;  %v87_v28 = vadd.s32 10, %v81_v27  ;;  %vm82_vm6 = vcmp.ge.s32.totalorder %v45_v1, %v81_v27 }
   0xd   :  { %vm84_vm10 = vcmp.ge.s32.totalorder %v78_v29, %v81_v27  ;;  %vm83_vm12 = vcmp.ge.s32.totalorder %v77_v31, %v81_v27  ;;  %v79_v37 = vadd.s32 24, %v45_v1  ;;  %vm86_vm15 = vcmp.ge.s32.totalorder %v80_v34, %v81_v27 }
   0xe   :  { %vm51_vm2 = vcmp.lt.s32.totalorder %v716_v3, %v50_v4  ;;  %70 = vmatpush.bf16.msra.mxu0 %v42_v10  ;;  %vm88_vm7 = vcmp.lt.s32.totalorder %v45_v1, %v87_v28  ;;  %vm90_vm11 = vcmp.lt.s32.totalorder %v78_v29, %v87_v28  ;;  %vm89_vm13 = vcmp.lt.s32.totalorder %v77_v31, %v87_v28 }
   0xf   :  { %vm52_vm3 = vmand %vm49_vm1, %vm51_vm2  ;;  %vm92_vm0 = vcmp.lt.s32.totalorder %v80_v34, %v87_v28  ;;  %v138_v50 = vmul.f32 %v722_v8, %v722_v8 }
  0x10   :  { %v577_v15 = vsel %vm52_vm3, 1.0, %v691_v14  ;;  %vm735_vm8 = vmand %vm82_vm6, %vm88_vm7  ;;  %vm85_vm3 = vcmp.ge.s32.totalorder %v79_v37, %v81_v27  ;;  %v139_v14 = vmul.f32 %v718_v5, %v718_v5 }
  0x11   :  { %v55_v16 = vpack.c.bf16 %v577_v15, %v577_v15  ;;  %vm745_vm14 = vmand %vm84_vm10, %vm90_vm11  ;;  %v149_v56 = vsel %vm100_vm5, %v138_v50, 0.0 }
  0x12   :  { %71 = vmatpush.bf16.msra.mxu0 %v41_v13  ;;  %vm751_vm1 = vmand %vm83_vm12, %vm89_vm13  ;;  %v152_v15 = vsel %vm100_vm5, %v139_v14, 0.0 }
  0x13   :  { %vm763_vm2 = vmand %vm86_vm15, %vm92_vm0 }
  0x14   :  { %147 = vadd.xlane.f32.xlu0 %v146_v22 }
  0x15   :  { %578 = vmatmul.msk.bf16.vlgmr.msra.gmra.mxu0 %vm56_vm4, %v55_v16  ;;  %vm91_vm4 = vcmp.lt.s32.totalorder %v79_v37, %v87_v28 }
  0x16   :  { %vm774_vm6 = vmand %vm85_vm3, %vm91_vm4 }
  0x7f   :  { %v813_v16 = vpop.xlane.xlu0 %144  ;;  %v823_v21 = vpop.xlane.xlu2 %141 }
  0x87   :  { %v815_v17 = vpop.xlane.xlu0 %147 }
  0x92   :  { %v73_v23 = vpop.f32.mrf.mxu0 }
  0x93   :  { %v99_v24 = vpack.c.bf16 %v73_v23, %v73_v23 }
  0x95   :  { %v110_v25 = vsel %vm100_vm5, %v99_v24, 0 }
  0x96   :  { %119 = vmatpush.bf16.xpose.msra.mxu1 %v110_v25  ;;  %587 = vmatpush.bf16.xpose.msra.mxu2 %v110_v25 }
  0x97   :  { %588 = vmatpush.bf16.xpose.msra.mxu3 %v110_v25 }
  0x9a   :  { %v75_v26 = vpop.f32.mrf.mxu0 }
  0x9d   :  { %579 = vmatmul.msk.bf16.vlgmr.msra.gmra.mxu1 %vm100_vm5, %v41_v13  ;;  %580 = vmatmul.msk.bf16.vlgmr.msra.gmra.mxu2 %vm100_vm5, %v42_v10 }
  0x9e   :  { %581 = vmatmul.msk.bf16.vlgmr.msra.gmra.mxu3 %vm100_vm5, %v43_v6 }
 0x11a   :  { %v739_v32 = vpop.f32.mrf.mxu1 }
 0x11b   :  { %v155_v33 = vsel %vm735_vm8, %v739_v32, 0.0 }
 0x11c   :  { %v161_v35 = vsel %vm160_vm9, %v155_v33, 0.0 }
 0x11d   :  { %162 = vadd.xlane.f32.xlu0 %v161_v35 }
 0x120   :  { %v749_v38 = vpop.f32.mrf.mxu2 }
 0x121   :  { %v755_v40 = vpop.f32.mrf.mxu3  ;;  %v157_v41 = vsel %vm745_vm14, %v749_v38, 0.0 }
 0x122   :  { %v760_v42 = vpop.f32.mrf.mxu1  ;;  %v167_v43 = vsel %vm160_vm9, %v157_v41, 0.0  ;;  %v159_v48 = vsel %vm763_vm2, %v755_v40, 0.0 }
 0x123   :  { %v156_v45 = vsel %vm751_vm1, %v760_v42, 0.0  ;;  %168 = vadd.xlane.f32.xlu1 %v167_v43  ;;  %v173_v52 = vsel %vm160_vm9, %v159_v48, 0.0 }
 0x124   :  { %v164_v46 = vsel %vm160_vm9, %v156_v45, 0.0 }
 0x125   :  { %165 = vadd.xlane.f32.xlu0 %v164_v46  ;;  %v176_v47 = vadd.f32 %v164_v46, %v161_v35 }
 0x127   :  { %v177_v55 = vadd.f32 %v176_v47, %v167_v43 }
 0x128   :  { %v780_v51 = vpop.f32.mrf.mxu2 }
 0x129   :  { %v158_v53 = vsel %vm774_vm6, %v780_v51, 0.0  ;;  %v133_v54 = vpop.f32.mrf.mxu3 }
 0x12a   :  { %v170_v57 = vsel %vm160_vm9, %v158_v53, 0.0 }
 0x12b   :  { %174 = vadd.xlane.f32.xlu1 %v173_v52  ;;  %v178_v58 = vadd.f32 %v177_v55, %v170_v57 }
 0x12d   :  { %150 = vadd.xlane.f32.xlu0 %v149_v56  ;;  %v179_v59 = vadd.f32 %v178_v58, %v173_v52 }
 0x12f   :  { %v180_v60 = vrot.slane %v179_v59, 4 }
 0x131   :  { %v181_v61 = vadd.f32 %v180_v60, %v179_v59 }
 0x133   :  { %171 = vadd.xlane.f32.xlu1 %v170_v57  ;;  %v182_v62 = vrot.slane %v181_v61, 2 }
 0x135   :  { %v183_v63 = vadd.f32 %v182_v62, %v181_v61 }
 0x137   :  { %v184_v0 = vrot.slane %v183_v63, 1 }
 0x139   :  { %v788_v1 = vadd.f32 %v184_v0, %v183_v63 }
 0x13b   :  { %v187_v2 = vsel %vm751_vm1, %v788_v1, 0.0  ;;  %v186_v4 = vsel %vm735_vm8, %v788_v1, 0.0  ;;  %v188_v8 = vsel %vm745_vm14, %v788_v1, 0.0  ;;  %v190_v9 = vsel %vm763_vm2, %v788_v1, 0.0 }
 0x13c   :  { %v194_v6 = vsel %vm160_vm9, %v187_v2, 0.0  ;;  %v191_v7 = vsel %vm160_vm9, %v186_v4, 0.0  ;;  %v197_v10 = vsel %vm160_vm9, %v188_v8, 0.0  ;;  %v203_v11 = vsel %vm160_vm9, %v190_v9, 0.0 }
 0x13d   :  { %195 = vadd.xlane.f32.xlu2 %v194_v6  ;;  %192 = vadd.xlane.f32.xlu1 %v191_v7  ;;  %v189_v12 = vsel %vm774_vm6, %v788_v1, 0.0  ;;  %v302_v20 = vmul.f32 %v788_v1, %v813_v16  ;;  %v301_v5 = vmul.f32 %v788_v1, %v823_v21  ;;  %v303_v24 = vmul.f32 %v788_v1, %v815_v17 }
 0x13e   :  { %v200_v13 = vsel %vm160_vm9, %v189_v12, 0.0 }
 0x13f   :  { %v307_v23 = vmax.f32 %v302_v20, 1e-14  ;;  %v831_v25 = vmax.f32 %v301_v5, 1e-14  ;;  %v835_v27 = vmax.f32 %v303_v24, 1e-14 }
 0x141   :  { %596 = vrsqrt.f32 %v307_v23  ;;  %vm327_vm7 = vweird.f32 %v307_v23  ;;  %vm337_vm12 = vweird.f32 %v835_v27  ;;  %vm317_vm13 = vweird.f32 %v831_v25 }
 0x142   :  { %598 = vrsqrt.f32 %v831_v25 }
 0x143   :  { %600 = vrsqrt.f32 %v835_v27 }
 0x145   :  { %198 = vadd.xlane.f32.xlu2 %v197_v10  ;;  %204 = vadd.xlane.f32.xlu1 %v203_v11 }
 0x147   :  { %v840_v29 = vpop.eup %596 }
 0x148   :  { %v322_v31 = vmul.f32 %v840_v29, %v307_v23  ;;  %v844_v33 = vpop.eup %598  ;;  %vm328_vm5 = vweird.f32 %v840_v29 }
 0x149   :  { %v850_v47 = vpop.eup %600  ;;  %v312_v48 = vmul.f32 %v844_v33, %v831_v25  ;;  %vm884_vm10 = vmor %vm327_vm7, %vm328_vm5  ;;  %vm318_vm11 = vweird.f32 %v844_v33 }
 0x14a   :  { %v323_v52 = vmul.f32 %v840_v29, %v322_v31  ;;  %v332_v55 = vmul.f32 %v850_v47, %v835_v27  ;;  %vm338_vm15 = vweird.f32 %v850_v47  ;;  %vm911_vm0 = vmor %vm317_vm13, %vm318_vm11 }
 0x14b   :  { %v313_v58 = vmul.f32 %v844_v33, %v312_v48  ;;  %vm939_vm13 = vmor %vm337_vm12, %vm338_vm15 }
 0x14c   :  { %v324_v60 = vmul.f32 0.5, %v323_v52  ;;  %v333_v2 = vmul.f32 %v850_v47, %v332_v55 }
 0x14d   :  { %201 = vadd.xlane.f32.xlu2 %v200_v13  ;;  %v314_v8 = vmul.f32 0.5, %v313_v58 }
 0x14e   :  { %v325_v9 = vsub.f32 1.5, %v324_v60  ;;  %v334_v11 = vmul.f32 0.5, %v333_v2 }
 0x14f   :  { %v315_v13 = vsub.f32 1.5, %v314_v8 }
 0x150   :  { %v326_v14 = vmul.f32 %v840_v29, %v325_v9 }
 0x152   :  { %v330_v23 = vsel %vm884_vm10, %v840_v29, %v326_v14 }
 0x153   :  { %v362_v60 = vmul.f32 %v330_v23, %v760_v42 }
 0x155   :  { %153 = vadd.xlane.f32.xlu2 %v152_v15 }
 0x190   :  { %v819_v19 = vpop.xlane.xlu0 %162 }
 0x191   :  { %v216_v34 = vmul.f32 2.0, %v819_v19 }
 0x196   :  { %v817_v18 = vpop.xlane.xlu1 %168 }
 0x197   :  { %v218_v61 = vmul.f32 2.0, %v817_v18  ;;  %v208_v27 = vsub.f32 %v817_v18, %v815_v17 }
 0x198   :  { %v833_v26 = vpop.xlane.xlu0 %165 }
 0x199   :  { %v217_v35 = vmul.f32 2.0, %v833_v26  ;;  %v207_v52 = vsub.f32 %v833_v26, %v813_v16 }
 0x19e   :  { %v825_v22 = vpop.xlane.xlu1 %174 }
 0x1a0   :  { %v848_v37 = vpop.xlane.xlu0 %150 }
 0x1a1   :  { %v304_v50 = vmul.f32 %v788_v1, %v848_v37 }
 0x1a3   :  { %v862_v59 = vmax.f32 %v304_v50, 1e-14  ;;  %v206_v50 = vsub.f32 %v819_v19, %v823_v21 }
 0x1a5   :  { %602 = vrsqrt.f32 %v862_v59 }
 0x1a6   :  { %v837_v28 = vpop.xlane.xlu1 %171 }
 0x1a7   :  { %v219_v15 = vmul.f32 2.0, %v837_v28 }
 0x1ab   :  { %v880_v5 = vpop.eup %602 }
 0x1b0   :  { %v196_v41 = vpop.xlane.xlu2 %195  ;;  %v193_v43 = vpop.xlane.xlu1 %192 }
 0x1b1   :  { %v222_v45 = vsub.f32 %v196_v41, %v217_v35  ;;  %v221_v46 = vsub.f32 %v193_v43, %v216_v34  ;;  %v335_v34 = vsub.f32 1.5, %v334_v11 }
 0x1b3   :  { %v227_v53 = vadd.f32 %v222_v45, %v813_v16  ;;  %v226_v54 = vadd.f32 %v221_v46, %v823_v21  ;;  %v316_v46 = vmul.f32 %v844_v33, %v315_v13  ;;  %v906_v19 = vmul.f32 %v850_v47, %v335_v34 }
 0x1b5   :  { %v232_v56 = vmul.f32 0.012345679, %v227_v53  ;;  %v231_v57 = vmul.f32 0.012345679, %v226_v54  ;;  %v342_v54 = vmul.f32 %v880_v5, %v862_v59  ;;  %v320_v26 = vsel %vm911_vm0, %v844_v33, %v316_v46 }
 0x1b7   :  { %v237_v62 = vmul.f32 %v232_v56, %v813_v16  ;;  %v236_v63 = vmul.f32 %v231_v57, %v823_v21  ;;  %v220_v21 = vmul.f32 2.0, %v825_v22  ;;  %v343_v2 = vmul.f32 %v880_v5, %v342_v54 }
 0x1b8   :  { %v199_v0 = vpop.xlane.xlu2 %198  ;;  %v205_v56 = vpop.xlane.xlu1 %204 }
 0x1b9   :  { %v868_v4 = vmax.f32 %v237_v62, 1e-16  ;;  %v870_v6 = vmax.f32 %v236_v63, 1e-16  ;;  %v223_v7 = vsub.f32 %v199_v0, %v218_v61  ;;  %v211_v61 = vmul.f32 0.11111111, %v206_v50 }
 0x1ba   :  { %v212_v62 = vmul.f32 0.11111111, %v207_v52  ;;  %v225_v0 = vsub.f32 %v205_v56, %v220_v21  ;;  %v344_v34 = vmul.f32 0.5, %v343_v2 }
 0x1bb   :  { %604 = vrsqrt.f32 %v868_v4  ;;  %v228_v10 = vadd.f32 %v223_v7, %v815_v17  ;;  %vm262_vm5 = vweird.f32 %v868_v4  ;;  %vm252_vm10 = vweird.f32 %v870_v6 }
 0x1bc   :  { %606 = vrsqrt.f32 %v870_v6 }
 0x1bd   :  { %v233_v12 = vmul.f32 0.012345679, %v228_v10 }
 0x1bf   :  { %v238_v20 = vmul.f32 %v233_v12, %v815_v17  ;;  %v966_v17 = vstv %s1099_s1 }
 0x1c0   :  { %v202_v24 = vpop.xlane.xlu2 %201 }
 0x1c1   :  { %v605_v31 = vpop.eup %604  ;;  %v882_v35 = vmax.f32 %v238_v20, 1e-16  ;;  %v224_v41 = vsub.f32 %v202_v24, %v219_v15 }
 0x1c2   :  { %v607_v45 = vpop.eup %606  ;;  %v257_v48 = vmul.f32 %v605_v31, %v868_v4  ;;  %vm263_vm3 = vweird.f32 %v605_v31 }
 0x1c3   :  { %v247_v53 = vmul.f32 %v607_v45, %v870_v6  ;;  %608 = vrsqrt.f32 %v882_v35  ;;  %v229_v29 = vadd.f32 %v224_v41, %v848_v37  ;;  %vm253_vm4 = vweird.f32 %v607_v45  ;;  %vm264_vm7 = vmor %vm262_vm5, %vm263_vm3 }
 0x1c4   :  { %v258_v55 = vmul.f32 %v605_v31, %v257_v48  ;;  %vm254_vm11 = vmor %vm252_vm10, %vm253_vm4  ;;  %v361_v48 = vmul.f32 %v320_v26, %v739_v32  ;;  %vm272_vm15 = vweird.f32 %v882_v35  ;;  %vm348_vm3 = vweird.f32 %v880_v5 }
 0x1c5   :  { %v248_v25 = vmul.f32 %v607_v45, %v247_v53  ;;  %v234_v58 = vmul.f32 0.012345679, %v229_v29  ;;  %vm347_vm4 = vweird.f32 %v862_v59 }
 0x1c6   :  { %v259_v57 = vmul.f32 0.5, %v258_v55  ;;  %v345_v55 = vsub.f32 1.5, %v344_v34  ;;  %vm988_vm5 = vmor %vm347_vm4, %vm348_vm3 }
 0x1c7   :  { %v249_v63 = vmul.f32 0.5, %v248_v25  ;;  %v239_v8 = vmul.f32 %v234_v58, %v848_v37  ;;  %v213_v25 = vmul.f32 0.11111111, %v208_v27 }
 0x1c8   :  { %v260_v7 = vsub.f32 1.5, %v259_v57  ;;  %v922_v9 = vpop.xlane.xlu2 %153 }
 0x1c9   :  { %v609_v10 = vpop.eup %608  ;;  %v250_v11 = vsub.f32 1.5, %v249_v63  ;;  %v230_v33 = vadd.f32 %v225_v0, %v922_v9  ;;  %v305_v42 = vmul.f32 %v788_v1, %v922_v9  ;;  %v929_v14 = vmax.f32 %v239_v8, 1e-16 }
 0x1ca   :  { %v261_v12 = vmul.f32 %v605_v31, %v260_v7  ;;  %v267_v13 = vmul.f32 %v609_v10, %v882_v35  ;;  %vm273_vm12 = vweird.f32 %v609_v10 }
 0x1cb   :  { %v251_v15 = vmul.f32 %v607_v45, %v250_v11  ;;  %v235_v20 = vmul.f32 0.012345679, %v230_v33  ;;  %v932_v24 = vmax.f32 %v305_v42, 1e-14  ;;  %610 = vrsqrt.f32 %v929_v14  ;;  %vm274_vm0 = vmor %vm272_vm15, %vm273_vm12 }
 0x1cc   :  { %v265_v41 = vsel %vm264_vm7, %v605_v31, %v261_v12  ;;  %v268_v43 = vmul.f32 %v609_v10, %v267_v13  ;;  %v340_v31 = vsel %vm939_vm13, %v850_v47, %v906_v19  ;;  %v209_v42 = vsub.f32 %v837_v28, %v848_v37 }
 0x1cd   :  { %v297_v4 = vmul.f32 %v265_v41, %v212_v62  ;;  %v255_v46 = vsel %vm254_vm11, %v607_v45, %v251_v15  ;;  %v240_v6 = vmul.f32 %v235_v20, %v922_v9  ;;  %612 = vrsqrt.f32 %v932_v24 }
 0x1ce   :  { %v296_v23 = vmul.f32 %v255_v46, %v211_v61  ;;  %v269_v50 = vmul.f32 0.5, %v268_v43  ;;  %v955_v45 = vstv %s1098_s0  ;;  %v363_v21 = vmul.f32 %v340_v31, %v749_v38  ;;  %s692_s0 = smov [#allocation7]  }
 0x1cf   :  { %v957_v52 = vmax.f32 %v240_v6, 1e-16  ;;  %v367_v53 = vsel %vm751_vm1, %v297_v4, %v362_v60  ;;  %v346_v61 = vmul.f32 %v880_v5, %v345_v55  ;;  %vm282_vm10 = vweird.f32 %v929_v14  ;;  %s565_s1 = sshll.u32 %s692_s0, 4  ;;  %s566_s1 = int_to_ptr.vmem [resolvable:$true] %s565_s1 }
 0x1d0   :  { %v366_v47 = vsel %vm735_vm8, %v296_v23, %v361_v48  ;;  %v270_v54 = vsub.f32 1.5, %v269_v50  ;;  %v372_v32 = vadd.f32 1e-06, %v367_v53  ;;  %v214_v28 = vmul.f32 0.11111111, %v209_v42 }
 0x1d1   :  { %v371_v56 = vadd.f32 1e-06, %v366_v47  ;;  %614 = vrsqrt.f32 %v957_v52  ;;  %v611_v18 = vpop.eup %610  ;;  %v350_v59 = vsel %vm988_vm5, %v880_v5, %v346_v61  ;;  %v210_v31 = vsub.f32 %v825_v22, %v922_v9 }
 0x1d2   :  { %v271_v29 = vmul.f32 %v609_v10, %v270_v54  ;;  %v378_v19 = vmul.f32 %v955_v45, %v372_v32  ;;  %v277_v57 = vmul.f32 %v611_v18, %v929_v14  ;;  %vm283_vm7 = vweird.f32 %v611_v18 }
 0x1d3   :  { %v971_v16 = vpop.eup %612  ;;  %v377_v26 = vmul.f32 %v955_v45, %v371_v56  ;;  %vm284_vm13 = vmor %vm282_vm10, %vm283_vm7  ;;  %v364_v46 = vmul.f32 %v350_v59, %v780_v51  ;;  %vm357_vm12 = vweird.f32 %v932_v24  ;;  %vm292_vm3 = vweird.f32 %v957_v52 }
 0x1d4   :  { %v275_v58 = vsel %vm274_vm0, %v609_v10, %v271_v29  ;;  %v352_v60 = vmul.f32 %v971_v16, %v932_v24  ;;  %v384_v35 = vadd.f32 %v966_v17, %v378_v19  ;;  %v278_v63 = vmul.f32 %v611_v18, %v277_v57 }
 0x1d5   :  { %v298_v62 = vmul.f32 %v275_v58, %v213_v25  ;;  %v383_v38 = vadd.f32 %v966_v17, %v377_v26  ;;  %vm358_vm11 = vweird.f32 %v971_v16  ;;  %v215_v54 = vmul.f32 0.11111111, %v210_v31 }
 0x1d6   :  { %v353_v0 = vmul.f32 %v971_v16, %v352_v60  ;;  %v583_v2 = vmul.f32 -1.442695, %v384_v35  ;;  %v279_v10 = vmul.f32 0.5, %v278_v63  ;;  %vm1007_vm0 = vmor %vm357_vm12, %vm358_vm11  ;;  %vm98_vm11 = vcmp.ge.s32.totalorder %v716_v3, 4 }
 0x1d7   :  { %v615_v7 = vpop.eup %614  ;;  %v368_v8 = vsel %vm745_vm14, %v298_v62, %v363_v21  ;;  %v582_v11 = vmul.f32 -1.442695, %v383_v38 }
 0x1d8   :  { %v373_v12 = vadd.f32 1e-06, %v368_v8  ;;  %v287_v13 = vmul.f32 %v615_v7, %v957_v52  ;;  %v354_v15 = vmul.f32 0.5, %v353_v0  ;;  %v280_v20 = vsub.f32 1.5, %v279_v10 }
 0x1d9   :  { %616 = vpow2.f32 %v583_v2  ;;  %vm293_vm15 = vweird.f32 %v615_v7 }
 0x1da   :  { %v379_v34 = vmul.f32 %v955_v45, %v373_v12  ;;  %v288_v41 = vmul.f32 %v615_v7, %v287_v13  ;;  %v355_v43 = vsub.f32 1.5, %v354_v15  ;;  %618 = vpow2.f32 %v582_v11  ;;  %vm294_vm4 = vmor %vm292_vm3, %vm293_vm15 }
 0x1db   :  { %v281_v1 = vmul.f32 %v611_v18, %v280_v20 }
 0x1dc   :  { %v289_v37 = vmul.f32 0.5, %v288_v41  ;;  %v356_v4 = vmul.f32 %v971_v16, %v355_v43  ;;  %v385_v5 = vadd.f32 %v966_v17, %v379_v34 }
 0x1dd   :  { %v285_v6 = vsel %vm284_vm13, %v611_v18, %v281_v1 }
 0x1de   :  { %v299_v48 = vmul.f32 %v285_v6, %v214_v28  ;;  %v290_v23 = vsub.f32 1.5, %v289_v37  ;;  %v584_v50 = vmul.f32 -1.442695, %v385_v5  ;;  %v360_v51 = vsel %vm1007_vm0, %v971_v16, %v356_v4 }
 0x1df   :  { %v617_v27 = vpop.eup %616  ;;  %v365_v18 = vmul.f32 %v360_v51, %v755_v40 }
 0x1e0   :  { %v619_v53 = vpop.eup %618  ;;  %v369_v22 = vsel %vm774_vm6, %v299_v48, %v364_v46  ;;  %v291_v9 = vmul.f32 %v615_v7, %v290_v23  ;;  %v404_v24 = vadd.f32 1.0, %v617_v27  ;;  %620 = vpow2.f32 %v584_v50 }
 0x1e1   :  { %v374_v47 = vadd.f32 1e-06, %v369_v22  ;;  %v403_v32 = vadd.f32 1.0, %v619_v53 }
 0x1e2   :  { %v295_v55 = vsel %vm294_vm4, %v615_v7, %v291_v9  ;;  %622 = vrcp.f32 %v404_v24  ;;  %v432_v38 = vand.u32 2147483647, %v404_v24  ;;  %v434_v0 = vand.u32 2147483648, %v404_v24 }
 0x1e3   :  { %v380_v56 = vmul.f32 %v955_v45, %v374_v47  ;;  %v300_v52 = vmul.f32 %v295_v55, %v215_v54  ;;  %624 = vrcp.f32 %v403_v32  ;;  %v417_v8 = vand.u32 2147483647, %v403_v32 }
 0x1e4   :  { %v419_v10 = vand.u32 2147483648, %v403_v32  ;;  %vm428_vm10 = vweird.f32 %v404_v24  ;;  %vm413_vm12 = vweird.f32 %v403_v32  ;;  %vm433_vm15 = vcmp.eq.f32.partialorder %v432_v38, 8.507059e+37 }
 0x1e5   :  { %v370_v29 = vsel %vm763_vm2, %v300_v52, %v365_v18  ;;  %v386_v19 = vadd.f32 %v966_v17, %v380_v56  ;;  %vm418_vm3 = vcmp.eq.f32.partialorder %v417_v8, 8.507059e+37 }
 0x1e6   :  { %v621_v16 = vpop.eup %620  ;;  %v375_v21 = vadd.f32 1e-06, %v370_v29  ;;  %v420_v59 = vor.u32 1.1754944e-38, %v419_v10 }
 0x1e7   :  { %v1022_v25 = vadd.f32 1.0, %v621_v16  ;;  %v585_v26 = vmul.f32 -1.442695, %v386_v19 }
 0x1e8   :  { %v623_v57 = vpop.eup %622  ;;  %v381_v58 = vmul.f32 %v955_v45, %v375_v21 }
 0x1e9   :  { %v625_v60 = vpop.eup %624  ;;  %v424_v35 = vmul.f32 %v623_v57, %v404_v24  ;;  %626 = vrcp.f32 %v1022_v25  ;;  %vm429_vm5 = vweird.f32 %v623_v57  ;;  %v447_v37 = vand.u32 2147483647, %v1022_v25 }
 0x1ea   :  { %v387_v40 = vadd.f32 %v966_v17, %v381_v58  ;;  %v409_v61 = vmul.f32 %v625_v60, %v403_v32  ;;  %628 = vpow2.f32 %v585_v26  ;;  %vm414_vm7 = vweird.f32 %v625_v60  ;;  %vm430_vm13 = vmor %vm428_vm10, %vm429_vm5 }
 0x1eb   :  { %v425_v62 = vsub.f32 1.0, %v424_v35  ;;  %v435_v17 = vor.u32 1.1754944e-38, %v434_v0  ;;  %vm415_vm0 = vmor %vm413_vm12, %vm414_vm7  ;;  %v449_v4 = vand.u32 2147483648, %v1022_v25  ;;  %vm443_vm7 = vweird.f32 %v1022_v25 }
 0x1ec   :  { %v586_v63 = vmul.f32 -1.442695, %v387_v40  ;;  %v410_v2 = vsub.f32 1.0, %v409_v61  ;;  %vm1041_vm5 = vmor %vm751_vm1, %vm98_vm11 }
 0x1ed   :  { %v426_v7 = vmul.f32 %v623_v57, %v425_v62  ;;  %vm1050_vm10 = vmor %vm735_vm8, %vm98_vm11  ;;  %v450_v27 = vor.u32 1.1754944e-38, %v449_v4 }
 0x1ee   :  { %630 = vpow2.f32 %v586_v63  ;;  %v411_v11 = vmul.f32 %v625_v60, %v410_v2 }
 0x1ef   :  { %v627_v45 = vpop.eup %626  ;;  %v427_v33 = vadd.f32 %v623_v57, %v426_v7 }
 0x1f0   :  { %v412_v42 = vadd.f32 %v625_v60, %v411_v11  ;;  %v439_v12 = vmul.f32 %v627_v45, %v1022_v25  ;;  %v629_v13 = vpop.eup %628  ;;  %vm444_vm4 = vweird.f32 %v627_v45 }
 0x1f1   :  { %v431_v15 = vsel %vm430_vm13, %v623_v57, %v427_v33  ;;  %v406_v43 = vadd.f32 1.0, %v629_v13  ;;  %vm445_vm13 = vmor %vm443_vm7, %vm444_vm4 }
 0x1f2   :  { %v436_v20 = vsel %vm433_vm15, %v435_v17, %v431_v15  ;;  %v416_v34 = vsel %vm415_vm0, %v625_v60, %v412_v42  ;;  %v440_v41 = vsub.f32 1.0, %v439_v12 }
 0x1f3   :  { %v484_v1 = vsel %vm751_vm1, %v436_v20, 0.0  ;;  %v421_v28 = vsel %vm418_vm3, %v420_v59, %v416_v34  ;;  %632 = vrcp.f32 %v406_v43  ;;  %vm448_vm1 = vcmp.eq.f32.partialorder %v447_v37, 8.507059e+37 }
 0x1f4   :  { %v631_v5 = vpop.eup %630  ;;  %v491_v46 = vsel %vm160_vm9, %v484_v1, 0.0  ;;  %v483_v6 = vsel %vm735_vm8, %v421_v28, 0.0  ;;  %v441_v31 = vmul.f32 %v627_v45, %v440_v41  ;;  %v509_v22 = vsel %vm1041_vm5, -inf, %v436_v20  ;;  %vm1067_vm8 = vmor %vm745_vm14, %vm98_vm11 }
 0x1f5   :  { %492 = vadd.xlane.f32.xlu1 %v491_v46  ;;  %v488_v48 = vsel %vm160_vm9, %v483_v6, 0.0  ;;  %v407_v39 = vadd.f32 1.0, %v631_v5  ;;  %v508_v30 = vsel %vm1050_vm10, -inf, %v421_v28  ;;  %v516_v54 = vsel %vm160_vm9, %v509_v22, -inf  ;;  %vm507_vm5 = vmor %vm763_vm2, %vm98_vm11 }
 0x1f6   :  { %489 = vadd.xlane.f32.xlu0 %v488_v48  ;;  %v442_v14 = vadd.f32 %v627_v45, %v441_v31  ;;  %v513_v55 = vsel %vm160_vm9, %v508_v30, -inf  ;;  %v462_v18 = vand.u32 2147483647, %v406_v43  ;;  %v464_v29 = vand.u32 2147483648, %v406_v43 }
 0x1f7   :  { %634 = vrcp.f32 %v407_v39  ;;  %vm458_vm15 = vweird.f32 %v406_v43  ;;  %v479_v60 = vand.u32 2147483648, %v407_v39  ;;  %v477_v36 = vand.u32 2147483647, %v407_v39 }
 0x1f8   :  { %v446_v51 = vsel %vm445_vm13, %v627_v45, %v442_v14  ;;  %vm463_vm3 = vcmp.eq.f32.partialorder %v462_v18, 8.507059e+37  ;;  %v465_v58 = vor.u32 1.1754944e-38, %v464_v29  ;;  %vm506_vm13 = vmor %vm774_vm6, %vm98_vm11 }
 0x1f9   :  { %v451_v53 = vsel %vm448_vm1, %v450_v27, %v446_v51  ;;  %v633_v24 = vpop.eup %632  ;;  %v480_v2 = vor.u32 1.1754944e-38, %v479_v60  ;;  %vm478_vm10 = vcmp.eq.f32.partialorder %v477_v36, 8.507059e+37 }
 0x1fa   :  { %v485_v9 = vsel %vm745_vm14, %v451_v53, 0.0  ;;  %v454_v32 = vmul.f32 %v633_v24, %v406_v43  ;;  %vm459_vm12 = vweird.f32 %v633_v24  ;;  %v510_v26 = vsel %vm1067_vm8, -inf, %v451_v53 }
 0x1fb   :  { %v494_v47 = vsel %vm160_vm9, %v485_v9, 0.0  ;;  %vm460_vm0 = vmor %vm458_vm15, %vm459_vm12  ;;  %v519_v62 = vsel %vm160_vm9, %v510_v26, -inf  ;;  %vm473_vm14 = vweird.f32 %v407_v39 }
 0x1fc   :  { %495 = vadd.xlane.f32.xlu2 %v494_v47  ;;  %v455_v56 = vsub.f32 1.0, %v454_v32 }
 0x1fd   :  { %517 = vmax.xlane.f32.xlu1 %v516_v54  ;;  %v635_v52 = vpop.eup %634 }
 0x1fe   :  { %514 = vmax.xlane.f32.xlu0 %v513_v55  ;;  %v456_v16 = vmul.f32 %v633_v24, %v455_v56  ;;  %v469_v21 = vmul.f32 %v635_v52, %v407_v39  ;;  %vm474_vm4 = vweird.f32 %v635_v52 }
 0x1ff   :  { %vm475_vm7 = vmor %vm473_vm14, %vm474_vm4 }
 0x200   :  { %v457_v25 = vadd.f32 %v633_v24, %v456_v16  ;;  %v470_v57 = vsub.f32 1.0, %v469_v21 }
 0x202   :  { %v461_v35 = vsel %vm460_vm0, %v633_v24, %v457_v25  ;;  %v471_v40 = vmul.f32 %v635_v52, %v470_v57 }
 0x203   :  { %v466_v61 = vsel %vm463_vm3, %v465_v58, %v461_v35 }
 0x204   :  { %v486_v63 = vsel %vm774_vm6, %v466_v61, 0.0  ;;  %v472_v38 = vadd.f32 %v635_v52, %v471_v40  ;;  %v511_v33 = vsel %vm506_vm13, -inf, %v466_v61 }
 0x205   :  { %v497_v0 = vsel %vm160_vm9, %v486_v63, 0.0  ;;  %v522_v42 = vsel %vm160_vm9, %v511_v33, -inf }
 0x206   :  { %520 = vmax.xlane.f32.xlu0 %v519_v62  ;;  %498 = vadd.xlane.f32.xlu2 %v497_v0  ;;  %v476_v7 = vsel %vm475_vm7, %v635_v52, %v472_v38 }
 0x207   :  { %v481_v8 = vsel %vm478_vm10, %v480_v2, %v476_v7 }
 0x208   :  { %v487_v10 = vsel %vm763_vm2, %v481_v8, 0.0  ;;  %v512_v11 = vsel %vm507_vm5, -inf, %v481_v8  ;;  %vm538_vm2 = vcmask 7168  }
 0x209   :  { %v500_v45 = vsel %vm160_vm9, %v487_v10, 0.0  ;;  %v525_v17 = vsel %vm160_vm9, %v512_v11, -inf  ;;  %vm558_vm9 = vcmask 0  }
 0x20a   :  { %501 = vadd.xlane.f32.xlu1 %v500_v45 }
 0x20e   :  { %526 = vmax.xlane.f32.xlu0 %v525_v17  ;;  %523 = vmax.xlane.f32.xlu2 %v522_v42 }
 0x268   :  { %v493_v13 = vpop.xlane.xlu1 %492 }
 0x269   :  { %v490_v12 = vpop.xlane.xlu0 %489  ;;  %v529_v44 = vsub.f32 1.0, %v493_v13 }
 0x26a   :  { %v528_v20 = vsub.f32 1.0, %v490_v12 }
 0x26f   :  { %v496_v3 = vpop.xlane.xlu2 %495 }
 0x270   :  { %v518_v49 = vpop.xlane.xlu1 %517  ;;  %v530_v41 = vsub.f32 1.0, %v496_v3 }
 0x271   :  { %v515_v15 = vpop.xlane.xlu0 %514  ;;  %v534_v1 = vadd.f32 %v529_v44, %v518_v49 }
 0x272   :  { %v533_v43 = vadd.f32 %v528_v20, %v515_v15 }
 0x273   :  { %v540_v5 = vsel %vm538_vm2, %v534_v1, 0.0 }
 0x274   :  { %v539_v4 = vsel %vm538_vm2, %v533_v43, 0.0 }
 0x275   :  { %v541_v23 = vadd.f32 %v540_v5, %v539_v4 }
 0x279   :  { %v521_v59 = vpop.xlane.xlu0 %520  ;;  %v499_v34 = vpop.xlane.xlu2 %498 }
 0x27a   :  { %v535_v28 = vadd.f32 %v530_v41, %v521_v59  ;;  %v531_v31 = vsub.f32 1.0, %v499_v34 }
 0x27c   :  { %v542_v48 = vsel %vm538_vm2, %v535_v28, 0.0 }
 0x27d   :  { %v502_v37 = vpop.xlane.xlu1 %501  ;;  %v543_v39 = vadd.f32 %v542_v48, %v541_v23 }
 0x27e   :  { %v532_v46 = vsub.f32 1.0, %v502_v37 }
 0x281   :  { %v527_v6 = vpop.xlane.xlu0 %526  ;;  %v524_v14 = vpop.xlane.xlu2 %523 }
 0x282   :  { %v536_v50 = vadd.f32 %v531_v31, %v524_v14  ;;  %v537_v27 = vadd.f32 %v532_v46, %v527_v6 }
 0x284   :  { %v544_v51 = vsel %vm538_vm2, %v536_v50, 0.0  ;;  %v546_v22 = vsel %vm538_vm2, %v537_v27, 0.0 }
 0x285   :  { %v545_v53 = vadd.f32 %v544_v51, %v543_v39 }
 0x287   :  { %v547_v9 = vadd.f32 %v546_v22, %v545_v53 }
 0x289   :  { %548 = vadd.xlane.f32.xlu1 %v547_v9 }
 0x2fc   :  { %v549_v30 = vpop.xlane.xlu1 %548 }
 0x2fd   :  { %v550_v24 = vrot.slane %v549_v30, 4 }
 0x2ff   :  { %v551_v47 = vadd.f32 %v550_v24, %v549_v30 }
 0x301   :  { %v552_v54 = vrot.slane %v551_v47, 2 }
 0x303   :  { %v553_v32 = vadd.f32 %v552_v54, %v551_v47 }
 0x305   :  { %v554_v55 = vrot.slane %v553_v32, 1 }
 0x307   :  { %v555_v56 = vadd.f32 %v554_v55, %v553_v32 }
 0x309   :  { %589 = vpush %v555_v56 }
 0x33a   :  { %s590_s25 = spop %589 }
 0x33b   :  { %v557_v52 = vstv %s590_s25 }
 0x33c   :  { %559 = vst.msk [vmem:[#allocation7] sm:$0x1] %vm558_vm9, %v557_v52 }
 0x33d   :  { %570 = dma.vmem_to_hbm [thread:$0]  %s566_s1, 16, %s568_s24, [#allocation6]  }
 0x33e   :  { %686 = dma.done.wait [#allocation6], 16  }
 0x33f   :  { %687 = vsyncadd [#allocation6], 4294967280 }
 0x340   :  { %575 = vsyncpa [#allocation5], 1 }
 0x341   :  { %576 = vsyncpa [#allocation6], 1 }

</bundles_post_ra>
